<compile_context>
chip_gen: v6e
topology: v6e:2x2x1
jax: 0.10.0
libtpu: 0.0.40
codegen_flags: <defaults>
</compile_context>

<pallas_src>
import jax
import jax.numpy as jnp
from jax.experimental import pallas as pl
from jax.experimental.pallas import tpu as pltpu


def mlp_kernel(params_ref, x_ref, o_ref):
    """x_ref: [F_in, TB] (batch on lanes), params_ref: [H, F_in+F_out+2],
    o_ref: [F_out, TB].

    Packed parameter columns:
      [0, F_in)              : w1[k, :]   (weights of input feature k)
      F_in                   : b1
      [F_in+1, F_in+1+F_out) : w2[:, m]
      F_in+1+F_out           : b2 (b2[m] stored at row m)
    """
    x = x_ref[...].astype(jnp.float32)          # [F_in, TB]
    p = params_ref[...]                         # [H, F_in + F_out + 2]
    f_in = x.shape[0]
    f_out = o_ref.shape[0]

    # ---- Layer 1: h[j, :] = relu(sum_k w1[k, j] * x[k, :] + b1[j]) ----
    # h is [H, TB] = 8 sublanes x TB lanes -> full vregs; unrolled rank-1 VPU
    # MACs (K=2 is far too small for the MXU).
    h = p[:, f_in:f_in + 1]                     # b1 column [H, 1]
    for k in range(f_in):
        h = h + p[:, k:k + 1] * x[k:k + 1, :]   # [H,1] * [1,TB] -> [H,TB]
    h = jnp.maximum(h, 0.0)                     # ReLU on free VALU slots

    # ---- Layer 2: y[m, :] = sum_j w2[j, m] * h[j, :] + b2[m] ----
    # F_out == 1 here: one VPU multiply + a single sublane reduce (no MXU).
    rows = []
    for m in range(f_out):
        w2_col = p[:, f_in + 1 + m:f_in + 2 + m]                    # [H, 1]
        b2_m = p[m:m + 1, f_in + 1 + f_out:f_in + 2 + f_out]        # [1, 1]
        rows.append(jnp.sum(w2_col * h, axis=0, keepdims=True) + b2_m)
    y = rows[0] if f_out == 1 else jnp.concatenate(rows, axis=0)    # [F_out, TB]
    o_ref[...] = y.astype(o_ref.dtype)


def _choose_lane_tile(batch, f_in, lane_tile=None, lane=128,
                      x_bytes_per_step=512 * 1024):
    """Pick the batch (lane) tile: multiple of 128 (or == batch when batch<128)."""
    if batch <= lane:
        return batch                      # single full-extent block
    if lane_tile is None:
        budget_cols = x_bytes_per_step // (4 * f_in)
        lane_tile = max(lane, (budget_cols // lane) * lane)
    else:
        lane_tile = max(lane, (int(lane_tile) // lane) * lane)
    tb = min(lane_tile, (batch // lane) * lane)
    # v7x has 2 TensorCores: keep >=2 grid steps on the "parallel" batch axis
    # when the batch is big enough (a free extra step on single-TC v5e/v6e).
    if pl.cdiv(batch, tb) == 1 and batch >= 2 * lane:
        tb = ((pl.cdiv(batch, 2) + lane - 1) // lane) * lane
    return tb


def simple_classifier_forward(x, w1, b1, w2, b2, *, lane_tile=None):
    """x: [B, F_in]; w1: [F_in, H]; b1: [H]; w2: [H, F_out]; b2: [F_out].

    Weights are stored pre-transposed relative to torch.nn.Linear so the math
    is plain x @ W + b (identical results).
    """
    B, F_in = x.shape
    H = w1.shape[1]
    F_out = w2.shape[1]
    assert F_out <= H, "b2 packing assumes F_out <= H"

    b1 = jnp.reshape(b1, (H,)).astype(jnp.float32)
    b2 = jnp.reshape(b2, (F_out,)).astype(jnp.float32)

    # Pack all parameters into one small VMEM-resident block [H, F_in+F_out+2].
    b2_col = jnp.zeros((H,), jnp.float32).at[:F_out].set(b2)
    params = jnp.concatenate(
        [jnp.transpose(w1).astype(jnp.float32), b1[:, None],
         w2.astype(jnp.float32), b2_col[:, None]], axis=1)

    # Lane-dense activations: batch on the lane axis.
    xt = jnp.transpose(x).astype(jnp.float32)          # [F_in, B]

    tb = _choose_lane_tile(B, F_in, lane_tile)
    n_tiles = pl.cdiv(B, tb)

    flops = 2 * B * (F_in * H + H * F_out)
    bytes_accessed = 4 * (B * F_in + params.size + B * F_out)

    out_t = pl.pallas_call(
        mlp_kernel,
        out_shape=jax.ShapeDtypeStruct((F_out, B), jnp.float32),
        grid_spec=pltpu.PrefetchScalarGridSpec(
            num_scalar_prefetch=0,
            grid=(n_tiles,),
            in_specs=[
                pl.BlockSpec(params.shape, lambda i: (0, 0)),   # resident params
                pl.BlockSpec((F_in, tb), lambda i: (0, i)),     # lane-dense x tile
            ],
            out_specs=pl.BlockSpec((F_out, tb), lambda i: (0, i)),
        ),
        compiler_params=pltpu.CompilerParams(
            dimension_semantics=("parallel",)),
        cost_estimate=pl.CostEstimate(
            flops=flops, transcendentals=0, bytes_accessed=bytes_accessed),
    )(params, xt)

    return jnp.transpose(out_t)                          # [B, F_out]


def reference_forward(x, w1, b1, w2, b2):
    h = jnp.maximum(x @ w1 + b1, 0.0)
    return h @ w2 + b2


if __name__ == "__main__":
    # Module config: input_size=2, hidden_size=8, output_size=1
    input_size, hidden_size, output_size = 2, 8, 1

    key = jax.random.PRNGKey(0)
    kx, k1, k2, k3, k4, kx2, kx3 = jax.random.split(key, 7)

    # Deterministic parameter init (uniform, akin to PyTorch's default Linear init).
    bound1 = 1.0 / (input_size ** 0.5)
    bound2 = 1.0 / (hidden_size ** 0.5)
    w1 = jax.random.uniform(k1, (input_size, hidden_size), jnp.float32, -bound1, bound1)
    b1 = jax.random.uniform(k2, (hidden_size,), jnp.float32, -bound1, bound1)
    w2 = jax.random.uniform(k3, (hidden_size, output_size), jnp.float32, -bound2, bound2)
    b2 = jax.random.uniform(k4, (output_size,), jnp.float32, -bound2, bound2)

    # 1) Single-tile path, batch < 128 (full-extent lane block, no padding).
    x = jax.random.normal(kx, (100, input_size), jnp.float32)
    out = jax.block_until_ready(simple_classifier_forward(x, w1, b1, w2, b2))
    ref = reference_forward(x, w1, b1, w2, b2)
    assert out.shape == (100, output_size)
    assert jnp.allclose(out, ref, atol=1e-5, rtol=1e-5)

    # 2) Multi-tile grid with a masked (non-divisible) last block: B=300, TB=128.
    x_big = jax.random.normal(kx2, (300, input_size), jnp.float32)
    out_big = jax.block_until_ready(
        simple_classifier_forward(x_big, w1, b1, w2, b2, lane_tile=128))
    ref_big = reference_forward(x_big, w1, b1, w2, b2)
    assert out_big.shape == (300, output_size)
    assert jnp.allclose(out_big, ref_big, atol=1e-5, rtol=1e-5)

    # 3) Tiny batch.
    x_small = jax.random.normal(kx3, (8, input_size), jnp.float32)
    out_small = jax.block_until_ready(
        simple_classifier_forward(x_small, w1, b1, w2, b2))
    ref_small = reference_forward(x_small, w1, b1, w2, b2)
    assert out_small.shape == (8, output_size)
    assert jnp.allclose(out_small, ref_small, atol=1e-5, rtol=1e-5)

    print("KERNEL_OK")
</pallas_src>

<mosaic_0001>
module attributes {stable_mosaic.version = 11 : i64} {
  func.func @mlp_kernel(%arg0: i32, %arg1: memref<8x5xf32, #tpu.memory_space<vmem>>, %arg2: memref<2x100xf32, #tpu.memory_space<vmem>>, %arg3: memref<1x100xf32, #tpu.memory_space<vmem>>) attributes {dimension_semantics = [#tpu.dimension_semantics<parallel>], iteration_bounds = array<i64: 1>, scalar_prefetch = 0 : i64, scratch_operands = 0 : i64, tpu.core_type = #tpu.core_type<tc>, window_params = [{pipeline_mode = #tpu.pipeline_mode<synchronous>, transform_indices = @transform_0, window_bounds = array<i64: 8, 5>}, {transform_indices = @transform_1, window_bounds = array<i64: 2, 100>}, {transform_indices = @transform_2, window_bounds = array<i64: 1, 100>}]} {
    %c0 = arith.constant 0 : index
    %c0_0 = arith.constant 0 : index
    %0 = vector.load %arg2[%c0, %c0_0] : memref<2x100xf32, #tpu.memory_space<vmem>>, vector<2x100xf32>
    %c0_1 = arith.constant 0 : index
    %c0_2 = arith.constant 0 : index
    %1 = vector.load %arg1[%c0_1, %c0_2] : memref<8x5xf32, #tpu.memory_space<vmem>>, vector<8x5xf32>
    %2 = vector.extract_strided_slice %1 {offsets = [0, 2], sizes = [8, 1], strides = [1, 1]} : vector<8x5xf32> to vector<8x1xf32>
    %3 = vector.extract_strided_slice %1 {offsets = [0, 0], sizes = [8, 1], strides = [1, 1]} : vector<8x5xf32> to vector<8x1xf32>
    %4 = vector.extract_strided_slice %0 {offsets = [0, 0], sizes = [1, 100], strides = [1, 1]} : vector<2x100xf32> to vector<1x100xf32>
    %5 = vector.broadcast %3 : vector<8x1xf32> to vector<8x100xf32>
    %6 = vector.broadcast %4 : vector<1x100xf32> to vector<8x100xf32>
    %7 = arith.mulf %5, %6 : vector<8x100xf32>
    %8 = vector.broadcast %2 : vector<8x1xf32> to vector<8x100xf32>
    %9 = arith.addf %8, %7 : vector<8x100xf32>
    %10 = vector.extract_strided_slice %1 {offsets = [0, 1], sizes = [8, 1], strides = [1, 1]} : vector<8x5xf32> to vector<8x1xf32>
    %11 = vector.extract_strided_slice %0 {offsets = [1, 0], sizes = [1, 100], strides = [1, 1]} : vector<2x100xf32> to vector<1x100xf32>
    %12 = vector.broadcast %10 : vector<8x1xf32> to vector<8x100xf32>
    %13 = vector.broadcast %11 : vector<1x100xf32> to vector<8x100xf32>
    %14 = arith.mulf %12, %13 : vector<8x100xf32>
    %15 = arith.addf %9, %14 : vector<8x100xf32>
    %cst = arith.constant 0.000000e+00 : f32
    %16 = vector.broadcast %cst : f32 to vector<8x100xf32>
    %17 = arith.maximumf %15, %16 : vector<8x100xf32>
    %18 = vector.extract_strided_slice %1 {offsets = [0, 3], sizes = [8, 1], strides = [1, 1]} : vector<8x5xf32> to vector<8x1xf32>
    %19 = vector.extract_strided_slice %1 {offsets = [0, 4], sizes = [1, 1], strides = [1, 1]} : vector<8x5xf32> to vector<1x1xf32>
    %20 = vector.broadcast %18 : vector<8x1xf32> to vector<8x100xf32>
    %21 = arith.mulf %20, %17 : vector<8x100xf32>
    %cst_3 = arith.constant dense<0.000000e+00> : vector<100xf32>
    %22 = vector.multi_reduction <add>, %21, %cst_3 [0] : vector<8x100xf32> to vector<100xf32>
    %23 = vector.shape_cast %22 : vector<100xf32> to vector<1x100xf32>
    %24 = vector.broadcast %19 : vector<1x1xf32> to vector<1x100xf32>
    %25 = arith.addf %23, %24 : vector<1x100xf32>
    %c0_4 = arith.constant 0 : index
    %c0_5 = arith.constant 0 : index
    %26 = vector.load %arg3[%c0_4, %c0_5] : memref<1x100xf32, #tpu.memory_space<vmem>>, vector<1x100xf32>
    tpu.vector_store %arg3[%c0_4, %c0_5], %25 {strides = array<i32>} : memref<1x100xf32, #tpu.memory_space<vmem>>, vector<1x100xf32>,
    return
  }
  func.func @transform_0(%arg0: i32) -> (i32, i32) {
    %c0_i32 = arith.constant 0 : i32
    %c0_i32_0 = arith.constant 0 : i32
    %c0_i32_1 = arith.constant 0 : i32
    return %c0_i32, %c0_i32_0 : i32, i32
  }
  func.func @transform_1(%arg0: i32) -> (i32, i32) {
    %c0_i32 = arith.constant 0 : i32
    %c0_i32_0 = arith.constant 0 : i32
    return %c0_i32, %arg0 : i32, i32
  }
  func.func @transform_2(%arg0: i32) -> (i32, i32) {
    %c0_i32 = arith.constant 0 : i32
    %c0_i32_0 = arith.constant 0 : i32
    return %c0_i32, %arg0 : i32, i32
  }
}

</mosaic_0001>

<bundles_post_ra>
// kernel: tpu_custom_call.1
= control target key start
LH: loop header
LB: loop body
LE: loop exit
PB: predicated region body
PF: predicated region fallthrough
CT: control target
= control target key end

     0   :  { %7 = vsyncpa [#allocation3], 0  ;;  %s212_s0 = inlined_call_operand.hbm [shape: f32[8,5], index: 0, kind: input, shape index: {}]   ;;  %s213_s1 = inlined_call_operand.hbm [shape: f32[2,100], index: 1, kind: input, shape index: {}]   ;;  %s214_s2 = inlined_call_operand.hbm [shape: f32[1,100], index: 2, kind: output, shape index: {}]  }
   0x1   :  { %8 = vsyncpa [#allocation6], 0 }
   0x2   :  { %9 = vsyncpa [#allocation4], 0  ;;  %s180_s9 = smov [#allocation2]   ;;  %s181_s11 = smov [#allocation5]  }
   0x3   :  { %s16_s10 = sshll.u32 %s180_s9, 4  ;;  %s26_s12 = sshll.u32 %s181_s11, 4  ;;  %s17_s10 = int_to_ptr.vmem [resolvable:$true] %s16_s10  ;;  %s27_s12 = int_to_ptr.vmem [resolvable:$true] %s26_s12 }
   0x4   :  { %s122_s13 = scalar_lea.vmem %s17_s10, 128  ;;  %p127_p1 = scmp.lt.s32.totalorder %s17_s10, %s17_s10 }
   0x5   :  { %p123_p0 = scmp.ne.s32.totalorder %s17_s10, %s122_s13  ;;  %p128_p2 = scmp.lt.s32.totalorder %s122_s13, %s122_s13 }
   0x7   :  { %p129_p3 = por %p128_p2, %p127_p1 }
   0x9   :  { %p130_p4 = pnand %p129_p3, %p123_p0 }
   0xb   :  { %133 = shalt.err (!%p130_p4)
}
   0xc   :  { %19 = dma.hbm_to_vmem [thread:$0]  %s212_s0, 128, %s17_s10, [#allocation3]  }
   0xd   :  { %s142_s16 = scalar_lea.vmem %s27_s12, 32  ;;  %p147_p6 = scmp.lt.s32.totalorder %s27_s12, %s27_s12 }
   0xe   :  { %p143_p5 = scmp.ne.s32.totalorder %s27_s12, %s142_s16  ;;  %p148_p7 = scmp.lt.s32.totalorder %s142_s16, %s142_s16 }
  0x10   :  { %p149_p8 = por %p148_p7, %p147_p6 }
  0x12   :  { %p150_p9 = pnand %p149_p8, %p143_p5 }
  0x14   :  { %153 = shalt.err (!%p150_p9)
}
  0x15   :  { %29 = dma.hbm_to_vmem [thread:$0]  %s213_s1, 32, %s27_s12, [#allocation6]  }
  0x16   :  { %174 = dma.done.wait [#allocation3], 128  }
  0x17   :  { %175 = vsyncadd [#allocation3], 4294967168 }
  0x18   :  { %176 = dma.done.wait [#allocation6], 32  }
  0x19   :  { %177 = vsyncadd [#allocation6], 4294967264  ;;  %v182_v0 = vmov 0   ;;  %v183_v1 = vmov 1   ;;  %v37_v2 = vld [vmem:[#allocation2] sm:$0xff]  ;;  %v184_v3 = vmov 2   ;;  %v43_v6 = vlaneseq }
  0x1a   :  { %108 = vset.pattern.permute.xlu0 %v182_v0  ;;  %110 = vset.pattern.permute.xlu1 %v183_v1  ;;  %v185_v4 = vmov 3   ;;  %v186_v5 = vmov 4   ;;  %v36_v10 = vld [vmem:[#allocation5] sm:$0x3]  ;;  %vm69_vm0 = vcmask 818176   ;;  %s187_s0 = smov [#allocation7]  }
  0x1b   :  { %40 = vperm.xlu0 %108, %v37_v2   ;;  %54 = vperm.xlu1 %110, %v37_v2   ;;  %v44_v7 = vshrl.u32 %v43_v6, 7  ;;  %s90_s1 = sshll.u32 %s187_s0, 4  ;;  %vm82_vm1 = vcmask 811008   ;;  %s91_s1 = int_to_ptr.vmem [resolvable:$true] %s90_s1 }
  0x1c   :  { %s154_s19 = scalar_lea.vmem %s91_s1, 16  ;;  %s158_s20 = scalar_lea.vmem %s91_s1, 32 }
  0x1d   :  { %v45_v8 = vsub.s32 0, %v44_v7  ;;  %v59_v9 = vsub.s32 1, %v44_v7  ;;  %p155_p10 = scmp.ne.s32.totalorder %s91_s1, %s154_s19  ;;  %p159_p11 = scmp.lt.s32.totalorder %s91_s1, %s91_s1 }
  0x1e   :  { %p160_p12 = scmp.lt.s32.totalorder %s158_s20, %s154_s19 }
  0x1f   :  { %109 = vset.pattern.permute.xlu0 %v184_v3  ;;  %111 = vset.pattern.permute.xlu1 %v185_v4  ;;  %v46_v12 = vrot.slane %v36_v10, %v45_v8  ;;  %v60_v13 = vrot.slane %v36_v10, %v59_v9 }
  0x20   :  { %49 = vperm.xlu0 %109, %v37_v2   ;;  %65 = vperm.xlu1 %111, %v37_v2   ;;  %p161_p13 = por %p160_p12, %p159_p11 }
  0x22   :  { %p162_p0 = pnand %p161_p13, %p155_p10 }
  0x24   :  { %112 = vset.pattern.permute.xlu1 %v186_v5  ;;  %113 = vset.pattern.permute.xlu0 %v186_v5 }
  0x25   :  { %78 = vperm.xlu1 %112, %v37_v2  }
  0x96   :  { %v41_v11 = vpop.permute.xlu0 %40  ;;  %v55_v14 = vpop.permute.xlu1 %54 }
  0x97   :  { %v47_v15 = vmul.f32 %v46_v12, %v41_v11  ;;  %v61_v16 = vmul.f32 %v60_v13, %v55_v14 }
  0x9b   :  { %v50_v17 = vpop.permute.xlu0 %49  ;;  %v66_v20 = vpop.permute.xlu1 %65 }
  0x9c   :  { %v52_v18 = vadd.f32 %v50_v17, %v47_v15 }
  0x9e   :  { %v62_v19 = vadd.f32 %v61_v16, %v52_v18 }
  0xa0   :  { %v63_v21 = vmax.f32 %v62_v19, 0.0  ;;  %v79_v29 = vpop.permute.xlu1 %78 }
  0xa2   :  { %v68_v22 = vmul.f32 %v66_v20, %v63_v21 }
  0xa4   :  { %v70_v23 = vsel %vm69_vm0, %v68_v22, 0.0 }
  0xa5   :  { %v71_v24 = vrot.slane %v70_v23, 4 }
  0xa7   :  { %v72_v25 = vadd.f32 %v71_v24, %v70_v23 }
  0xa9   :  { %v73_v26 = vrot.slane %v72_v25, 2 }
  0xab   :  { %v74_v27 = vadd.f32 %v73_v26, %v72_v25 }
  0xad   :  { %v75_v28 = vrot.slane %v74_v27, 1 }
  0xaf   :  { %v76_v30 = vadd.f32 %v75_v28, %v74_v27 }
  0xb1   :  { %v81_v31 = vadd.f32 %v79_v29, %v76_v30 }
  0xb3   :  { %83 = vst.msk [vmem:[#allocation7] sm:$0x1] %vm82_vm1, %v81_v31 }
  0xb4   :  { %165 = shalt.err (!%p162_p0)
}
  0xb5   :  { %93 = dma.vmem_to_hbm [thread:$0]  %s91_s1, 16, %s214_s2, [#allocation4]  }
  0xb6   :  { %178 = dma.done.wait [#allocation4], 16  }
  0xb7   :  { %179 = vsyncadd [#allocation4], 4294967280 }
  0xb8   :  { %97 = vsyncpa [#allocation3], 1 }
  0xb9   :  { %98 = vsyncpa [#allocation6], 1 }
  0xba   :  { %99 = vsyncpa [#allocation4], 1 }

</bundles_post_ra>
